<compile_context>
chip_gen: v5e
topology: v5e:2x2
jax: 0.10.0
libtpu: 0.0.40
codegen_flags: <defaults>
</compile_context>

<pallas_src>
import functools

import jax
import jax.numpy as jnp
from jax.experimental import pallas as pl
from jax.experimental.pallas import tpu as pltpu

LANES = 128
SUBLANES = 8
# 2048 rows x 128 lanes x 4 B = 1 MiB per f32 input block.
# 2 inputs x 2 pipeline buffers (+ output) stays far under the v7x VMEM budget.
MAX_BLOCK_ROWS = 2048


# ---------------------------------------------------------------------------
# Kernels
# ---------------------------------------------------------------------------
def _partial_sumsq_kernel(x_ref, y_ref, o_ref):
    """Per-block partial sum of (x - y)^2, kept as an (1, 8, 128) vector.

    x_ref/y_ref: (block_chunks, 8, 128) in native dtype.
    o_ref:       (1, 8, 128) f32 partial sum for this grid block.
    The axis-0 reduction is plain VPU vector accumulation (no per-step XLU
    cross-lane reduce, no scalar dependency chain).
    """
    d = x_ref[...].astype(jnp.float32) - y_ref[...].astype(jnp.float32)
    o_ref[...] = jnp.sum(d * d, axis=0, keepdims=True)


def _sq_diff_kernel(x_ref, y_ref, o_ref):
    """Elementwise (x - y)^2, computed in f32, stored in output dtype."""
    d = x_ref[...].astype(jnp.float32) - y_ref[...].astype(jnp.float32)
    o_ref[...] = (d * d).astype(o_ref.dtype)


# ---------------------------------------------------------------------------
# Wrapper helpers
# ---------------------------------------------------------------------------
def _plan(n):
    """Choose (rows_padded, block_rows) for a flat length-n array.

    Rows are 128-lane rows. block_rows is a multiple of 8 (sublane aligned);
    small inputs get a single full-array block (no padding beyond lane/sublane
    alignment), large inputs get 1 MiB blocks with minimal tail padding.
    """
    rows = pl.cdiv(n, LANES)
    rows8 = pl.cdiv(rows, SUBLANES) * SUBLANES
    if rows8 <= MAX_BLOCK_ROWS:
        block_rows = rows8
        rows_padded = rows8
    else:
        block_rows = MAX_BLOCK_ROWS
        rows_padded = pl.cdiv(rows8, MAX_BLOCK_ROWS) * MAX_BLOCK_ROWS
    return rows_padded, block_rows


def _flatten_pad(a, rows_padded):
    """Flatten to 1D (free) and zero-pad the tail only if actually needed."""
    flat = a.reshape(-1)
    pad = rows_padded * LANES - flat.shape[0]
    if pad:
        flat = jnp.pad(flat, (0, pad))
    return flat


# ---------------------------------------------------------------------------
# Public entry point
# ---------------------------------------------------------------------------
@functools.partial(jax.jit, static_argnames=("return_mean",))
def pointwise_loss(output, y, return_mean=True):
    assert output.shape == y.shape, "output and y must have the same shape"

    n = output.size  # static at trace time
    rows_padded, block_rows = _plan(n)
    num_blocks = rows_padded // block_rows

    x_flat = _flatten_pad(output, rows_padded)
    y_flat = _flatten_pad(y, rows_padded)

    if return_mean:
        chunks = rows_padded // SUBLANES
        block_chunks = block_rows // SUBLANES
        x3 = x_flat.reshape(chunks, SUBLANES, LANES)
        y3 = y_flat.reshape(chunks, SUBLANES, LANES)

        partials = pl.pallas_call(
            _partial_sumsq_kernel,
            out_shape=jax.ShapeDtypeStruct(
                (num_blocks, SUBLANES, LANES), jnp.float32
            ),
            grid_spec=pltpu.PrefetchScalarGridSpec(
                num_scalar_prefetch=0,
                grid=(num_blocks,),
                in_specs=[
                    pl.BlockSpec(
                        (block_chunks, SUBLANES, LANES), lambda i: (i, 0, 0)
                    ),
                    pl.BlockSpec(
                        (block_chunks, SUBLANES, LANES), lambda i: (i, 0, 0)
                    ),
                ],
                out_specs=pl.BlockSpec(
                    (1, SUBLANES, LANES), lambda i: (i, 0, 0)
                ),
            ),
            compiler_params=pltpu.CompilerParams(
                dimension_semantics=("parallel",)
            ),
        )(x3, y3)

        # Tiny final reduce over (num_blocks, 8, 128) partials done by XLA.
        # Zero padding contributes 0; divide by the TRUE element count.
        mean = jnp.sum(partials) / jnp.float32(n)
        return mean.astype(output.dtype)

    # return_mean=False: elementwise squared difference, same shape/dtype.
    x2 = x_flat.reshape(rows_padded, LANES)
    y2 = y_flat.reshape(rows_padded, LANES)

    loss2d = pl.pallas_call(
        _sq_diff_kernel,
        out_shape=jax.ShapeDtypeStruct((rows_padded, LANES), output.dtype),
        grid_spec=pltpu.PrefetchScalarGridSpec(
            num_scalar_prefetch=0,
            grid=(num_blocks,),
            in_specs=[
                pl.BlockSpec((block_rows, LANES), lambda i: (i, 0)),
                pl.BlockSpec((block_rows, LANES), lambda i: (i, 0)),
            ],
            out_specs=pl.BlockSpec((block_rows, LANES), lambda i: (i, 0)),
        ),
        compiler_params=pltpu.CompilerParams(
            dimension_semantics=("parallel",)
        ),
    )(x2, y2)

    flat_out = loss2d.reshape(-1)
    if rows_padded * LANES != n:
        # Only slice when padding was actually applied.
        flat_out = flat_out[:n]
    return flat_out.reshape(output.shape)


# ---------------------------------------------------------------------------
# Main
# ---------------------------------------------------------------------------
if __name__ == "__main__":
    key = jax.random.PRNGKey(0)
    k1, k2 = jax.random.split(key)

    # NCHW-like small shapes: batch=2, channels=4, spatial=16x16
    shape = (2, 4, 16, 16)
    output = jax.random.normal(k1, shape, dtype=jnp.float32)
    target = jax.random.normal(k2, shape, dtype=jnp.float32)

    # mean-reduced loss (default path)
    loss_mean = jax.block_until_ready(
        pointwise_loss(output, target, return_mean=True)
    )

    # elementwise loss path
    loss_elem = jax.block_until_ready(
        pointwise_loss(output, target, return_mean=False)
    )

    # reference check (plain JAX)
    ref_mean = jnp.mean((output - target) ** 2)
    ref_elem = (output - target) ** 2
    assert jnp.allclose(loss_mean, ref_mean, rtol=1e-6, atol=1e-6), (
        loss_mean,
        ref_mean,
    )
    assert jnp.allclose(loss_elem, ref_elem, rtol=1e-6, atol=1e-6)

    print("KERNEL_OK")
</pallas_src>

<mosaic_0001>
module attributes {stable_mosaic.version = 11 : i64} {
  func.func @_partial_sumsq_kernel(%arg0: i32, %arg1: memref<2x8x128xf32, #tpu.memory_space<vmem>>, %arg2: memref<2x8x128xf32, #tpu.memory_space<vmem>>, %arg3: memref<1x8x128xf32, #tpu.memory_space<vmem>>) attributes {dimension_semantics = [#tpu.dimension_semantics<parallel>], iteration_bounds = array<i64: 1>, scalar_prefetch = 0 : i64, scratch_operands = 0 : i64, tpu.core_type = #tpu.core_type<tc>, window_params = [{transform_indices = @transform_0, window_bounds = array<i64: 2, 8, 128>}, {transform_indices = @transform_1, window_bounds = array<i64: 2, 8, 128>}, {transform_indices = @transform_2, window_bounds = array<i64: 1, 8, 128>}]} {
    %c0 = arith.constant 0 : index
    %c0_0 = arith.constant 0 : index
    %c0_1 = arith.constant 0 : index
    %0 = vector.load %arg1[%c0, %c0_0, %c0_1] : memref<2x8x128xf32, #tpu.memory_space<vmem>>, vector<2x8x128xf32>
    %c0_2 = arith.constant 0 : index
    %c0_3 = arith.constant 0 : index
    %c0_4 = arith.constant 0 : index
    %1 = vector.load %arg2[%c0_2, %c0_3, %c0_4] : memref<2x8x128xf32, #tpu.memory_space<vmem>>, vector<2x8x128xf32>
    %2 = arith.subf %0, %1 : vector<2x8x128xf32>
    %3 = arith.mulf %2, %2 : vector<2x8x128xf32>
    %cst = arith.constant dense<0.000000e+00> : vector<8x128xf32>
    %4 = vector.multi_reduction <add>, %3, %cst [0] : vector<2x8x128xf32> to vector<8x128xf32>
    %5 = vector.shape_cast %4 : vector<8x128xf32> to vector<1x8x128xf32>
    %c0_5 = arith.constant 0 : index
    %c0_6 = arith.constant 0 : index
    %c0_7 = arith.constant 0 : index
    %6 = vector.load %arg3[%c0_5, %c0_6, %c0_7] : memref<1x8x128xf32, #tpu.memory_space<vmem>>, vector<1x8x128xf32>
    tpu.vector_store %arg3[%c0_5, %c0_6, %c0_7], %5 {strides = array<i32>} : memref<1x8x128xf32, #tpu.memory_space<vmem>>, vector<1x8x128xf32>,
    return
  }
  func.func @transform_0(%arg0: i32) -> (i32, i32, i32) {
    %c0_i32 = arith.constant 0 : i32
    %c0_i32_0 = arith.constant 0 : i32
    %c0_i32_1 = arith.constant 0 : i32
    return %arg0, %c0_i32, %c0_i32_0 : i32, i32, i32
  }
  func.func @transform_1(%arg0: i32) -> (i32, i32, i32) {
    %c0_i32 = arith.constant 0 : i32
    %c0_i32_0 = arith.constant 0 : i32
    %c0_i32_1 = arith.constant 0 : i32
    return %arg0, %c0_i32, %c0_i32_0 : i32, i32, i32
  }
  func.func @transform_2(%arg0: i32) -> (i32, i32, i32) {
    %c0_i32 = arith.constant 0 : i32
    %c0_i32_0 = arith.constant 0 : i32
    %c0_i32_1 = arith.constant 0 : i32
    return %arg0, %c0_i32, %c0_i32_0 : i32, i32, i32
  }
}

</mosaic_0001>

<bundles_post_ra>
// kernel: pointwise_loss.1
= control target key start
LH: loop header
LB: loop body
LE: loop exit
PB: predicated region body
PF: predicated region fallthrough
CT: control target
= control target key end

     0   :  { %s55_s0 = inlined_call_operand.vmem [shape: f32[2,8,128], index: 0, kind: input, shape index: {}]   ;;  %s56_s1 = inlined_call_operand.vmem [shape: f32[2,8,128], index: 1, kind: input, shape index: {}]   ;;  %s57_s2 = inlined_call_operand.vmem [shape: f32[1,8,128], index: 2, kind: output, shape index: {}]  }
   0x1   :  { %v11_v0 = vld [vmem:[%s55_s0] sm:$0xff]  ;;  %v12_v1 = vld [vmem:[%s55_s0 + $0x8] sm:$0xff] }
   0x2   :  { %v13_v2 = vld [vmem:[%s56_s1] sm:$0xff]  ;;  %v14_v3 = vld [vmem:[%s56_s1 + $0x8] sm:$0xff] }
   0x3   :  { %v15_v4 = vsub.f32 %v11_v0, %v13_v2  ;;  %v16_v5 = vsub.f32 %v12_v1, %v14_v3 }
   0x5   :  { %v17_v6 = vmul.f32 %v15_v4, %v15_v4  ;;  %v18_v7 = vmul.f32 %v16_v5, %v16_v5 }
   0x7   :  { %v19_v8 = vadd.f32 %v18_v7, %v17_v6 }
   0x9   :  { %20 = vst [vmem:[%s57_s2] sm:$0xff] %v19_v8 }

</bundles_post_ra>
